<compile_context>
chip_gen: v6e
topology: v6e:2x2x1
jax: 0.10.0
libtpu: 0.0.40
codegen_flags: <defaults>
</compile_context>

<pallas_src>
import jax
import jax.numpy as jnp
from jax.experimental import pallas as pl
from jax.experimental.pallas import tpu as pltpu

# Quantization ranges (assumed spec: A = unsigned 8-bit affine, W = signed 8-bit symmetric).
A_QMIN, A_QMAX = 0.0, 255.0
W_QMIN, W_QMAX = -128.0, 127.0

# 48 MiB is safe on v5e/v6e (128 MiB physical) and v7x (64 MiB physical).
# TODO(synk): raise toward 96 MiB on v5e/v6e (and re-derive tiling for v7x)
#             once per-image slabs / patch tiles grow for large images.
_VMEM_LIMIT = 48 * 1024 * 1024


# ----------------------------- calibration (glue) -----------------------------
def _calibrate_act(x):
    xmin = jnp.minimum(jnp.min(x), 0.0)
    xmax = jnp.maximum(jnp.max(x), 0.0)
    scale = jnp.maximum((xmax - xmin) / (A_QMAX - A_QMIN), 1e-8)
    zp = jnp.clip(jnp.round(A_QMIN - xmin / scale), A_QMIN, A_QMAX)
    return scale.astype(jnp.float32), zp.astype(jnp.float32)


def _calibrate_weight(w):
    amax = jnp.maximum(jnp.max(jnp.abs(w)), 1e-8)
    return (amax / W_QMAX).astype(jnp.float32)


# ----------------------------- fused Pallas kernel -----------------------------
def _make_fused_conv_kernel(kh, kw, dh, dw, wp, m_tap, c):
    """act-quant + in-VMEM im2col + bf16 MXU GEMM + dequant epilogue (one image/step)."""

    def kernel(qp_ref, x_ref, w_ref, b_ref, o_ref, p_ref):
        # qp_ref: (3,)  SMEM f32  = [1/x_scale, x_zero_point, x_scale*w_scale]
        # x_ref : (1, C, L) f32   zero-padded, spatially-flattened input slab
        # w_ref : (O, K)   bf16   quantized weight codes (K = KH*KW*C), resident
        # b_ref : (O, 1)   f32    bias column (broadcast over lanes)
        # o_ref : (1, O, M) f32   output on the stride-1 padded-width grid, lane-padded
        # p_ref : (K, M)   f32    VMEM scratch for the patch matrix
        inv_s = qp_ref[0]
        zp = qp_ref[1]
        out_scale = qp_ref[2]

        x = x_ref[0]                                                   # (C, L) f32
        # Per-tensor affine fake-quant -> centred integer codes (|q - zp| <= 255,
        # exact in bf16).  Done once for the whole slab; taps reuse it from VMEM.
        q = jnp.clip(jnp.round(x * inv_s + zp), A_QMIN, A_QMAX) - zp   # f32 codes

        # In-VMEM im2col: KH*KW shifted static slices of the flat slab.
        for i in range(kh):
            for j in range(kw):
                off = i * dh * wp + j * dw
                row = (i * kw + j) * c
                p_ref[row:row + c, :] = q[:, off:off + m_tap]

        patches = p_ref[...].astype(jnp.bfloat16)                      # (K, M) codes
        acc = jnp.dot(w_ref[...], patches,
                      preferred_element_type=jnp.float32)              # (O, M) f32 MXU
        o_ref[0] = acc * out_scale + b_ref[...]

    return kernel


# ----------------------------- forward -----------------------------
def qat_conv2d_forward(x, weight, bias=None, stride=(1, 1), padding=(1, 1),
                       dilation=(1, 1)):
    # TODO(synk): groups > 1 not implemented (module default / test uses groups=1).
    n, c, h, w = x.shape
    o_c, _, kh, kw = weight.shape
    sh, sw = stride
    ph, pw = padding
    dh, dw = dilation

    # ---- per-tensor calibration (cheap global reductions, plain JAX) ----
    x_s, x_zp = _calibrate_act(x)
    x_inv_s = (1.0 / x_s).astype(jnp.float32)
    w_s = _calibrate_weight(weight)
    w_inv_s = (1.0 / w_s).astype(jnp.float32)

    # ---- weight fake-quant: hoisted, done exactly once, integer codes in bf16 ----
    k_dim = c * kh * kw
    q_w = jnp.clip(jnp.round(weight.astype(jnp.float32) * w_inv_s), W_QMIN, W_QMAX)
    # Row order must match the in-kernel tap order: (kh, kw, c).
    wmat = q_w.transpose(0, 2, 3, 1).reshape(o_c, k_dim).astype(jnp.bfloat16)
    if bias is None:
        bias = jnp.zeros((o_c,), jnp.float32)
    bcol = bias.reshape(o_c, 1).astype(jnp.float32)

    # ---- geometry: stride-1 grid over the full padded width ("flat-offset" im2col) ----
    hp, wp = h + 2 * ph, w + 2 * pw
    h1 = hp - dh * (kh - 1)                    # stride-1 output height
    w1 = wp - dw * (kw - 1)                    # stride-1 output width (valid columns)
    assert h1 >= 1 and w1 >= 1, "kernel larger than padded input"
    ho = (h1 - 1) // sh + 1                    # true (strided) output size
    wo = (w1 - 1) // sw + 1
    m1 = h1 * wp                               # stride-1 positions incl. wrap columns
    m_pad = max(128, ((m1 + 127) // 128) * 128)        # lane-dense (unmasked) stores
    off_max = (kh - 1) * dh * wp + (kw - 1) * dw
    l_flat = off_max + m_pad                   # flat slab length seen by the kernel

    # ---- zero-pad + flatten input: one ~1x HBM pass (vs 9x im2col before) ----
    # Padding before quantization is exact: quantize(0) -> centred code 0.
    # TODO(synk): fold the spatial zero-pad into the kernel (pl.ANY slab + manual
    #             DMA) to drop this remaining f32 copy of x.
    xpad = jnp.pad(x.astype(jnp.float32), ((0, 0), (0, 0), (ph, ph), (pw, pw)))
    xflat = jnp.pad(xpad.reshape(n, c, hp * wp),
                    ((0, 0), (0, 0), (0, l_flat - hp * wp)))

    qparams = jnp.stack([x_inv_s, x_zp, x_s * w_s]).astype(jnp.float32)

    kernel = _make_fused_conv_kernel(kh, kw, dh, dw, wp, m_pad, c)

    out_flat = pl.pallas_call(
        kernel,
        out_shape=jax.ShapeDtypeStruct((n, o_c, m_pad), jnp.float32),
        grid=(n,),                                                 # >= 2 -> both v7x TCs
        in_specs=[
            pl.BlockSpec(memory_space=pltpu.SMEM),                 # [1/x_s, x_zp, x_s*w_s]
            pl.BlockSpec((1, c, l_flat), lambda i: (i, 0, 0)),     # one image slab
            pl.BlockSpec((o_c, k_dim), lambda i: (0, 0)),          # resident weight codes
            pl.BlockSpec((o_c, 1), lambda i: (0, 0)),              # bias column
        ],
        out_specs=pl.BlockSpec((1, o_c, m_pad), lambda i: (i, 0, 0)),   # (N, O, spatial)
        scratch_shapes=[pltpu.VMEM((k_dim, m_pad), jnp.float32)],  # patch matrix
        compiler_params=pltpu.CompilerParams(
            dimension_semantics=("parallel",),
            vmem_limit_bytes=_VMEM_LIMIT),
    )(qparams, xflat, wmat, bcol)

    # Drop lane padding + wrap-around columns; subsample rows/cols for stride > 1.
    # TODO(synk): stride > 1 currently computes the full stride-1 grid (sh*sw x
    #             extra MXU work); emit only the strided rows in-kernel instead.
    out = out_flat[:, :, :m1].reshape(n, o_c, h1, wp)
    out = out[:, :, 0:(ho - 1) * sh + 1:sh, 0:(wo - 1) * sw + 1:sw]
    return out


# ----------------------------- reference (plain JAX) -----------------------------
def _reference(x, weight, bias, stride, padding, dilation):
    x_s, x_zp = _calibrate_act(x)
    w_s = _calibrate_weight(weight)
    xq = (jnp.clip(jnp.round(x * (1.0 / x_s) + x_zp), A_QMIN, A_QMAX) - x_zp) * x_s
    wq = jnp.clip(jnp.round(weight * (1.0 / w_s)), W_QMIN, W_QMAX) * w_s
    y = jax.lax.conv_general_dilated(
        xq, wq, window_strides=stride,
        padding=[(padding[0], padding[0]), (padding[1], padding[1])],
        rhs_dilation=dilation,
        dimension_numbers=("NCHW", "OIHW", "NCHW"),
        precision=jax.lax.Precision.HIGHEST)
    return y + bias[None, :, None, None]


if __name__ == "__main__":
    # Small Conv2d config: in_channels=4, out_channels=8, kernel=3, stride=1,
    # padding=1, dilation=1, groups=1, bias=True.
    key = jax.random.PRNGKey(0)
    kx, kwt, kb = jax.random.split(key, 3)

    N, C, H, W = 2, 4, 16, 16
    O, KH, KW = 8, 3, 3

    x = jax.random.normal(kx, (N, C, H, W), dtype=jnp.float32)
    fan_in = C * KH * KW
    weight = jax.random.normal(kwt, (O, C, KH, KW), dtype=jnp.float32) * (fan_in ** -0.5)
    bias = jax.random.normal(kb, (O,), dtype=jnp.float32) * 0.1

    y = qat_conv2d_forward(x, weight, bias,
                           stride=(1, 1), padding=(1, 1), dilation=(1, 1))
    y = jax.block_until_ready(y)

    y_ref = _reference(x, weight, bias, (1, 1), (1, 1), (1, 1))
    assert y.shape == (N, O, H, W), y.shape
    err = float(jnp.max(jnp.abs(y - y_ref)))
    assert jnp.allclose(y, y_ref, rtol=1e-3, atol=1e-3), err

    print("KERNEL_OK")
</pallas_src>

<mosaic_0001>
module attributes {stable_mosaic.version = 11 : i64} {
  func.func @kernel(%arg0: i32, %arg1: memref<3xf32, #tpu.memory_space<smem>>, %arg2: memref<1x4x422xf32, #tpu.memory_space<vmem>>, %arg3: memref<8x36xbf16, #tpu.memory_space<vmem>>, %arg4: memref<8x1xf32, #tpu.memory_space<vmem>>, %arg5: memref<1x8x384xf32, #tpu.memory_space<vmem>>, %arg6: memref<36x384xf32, #tpu.memory_space<vmem>>) attributes {dimension_semantics = [#tpu.dimension_semantics<parallel>], iteration_bounds = array<i64: 2>, scalar_prefetch = 0 : i64, scratch_operands = 1 : i64, tpu.core_type = #tpu.core_type<tc>, window_params = [{transform_indices = @transform_0, window_bounds = array<i64: 3>}, {transform_indices = @transform_1, window_bounds = array<i64: 1, 4, 422>}, {pipeline_mode = #tpu.pipeline_mode<synchronous>, transform_indices = @transform_2, window_bounds = array<i64: 8, 36>}, {pipeline_mode = #tpu.pipeline_mode<synchronous>, transform_indices = @transform_3, window_bounds = array<i64: 8, 1>}, {transform_indices = @transform_4, window_bounds = array<i64: 1, 8, 384>}]} {
    %c0 = arith.constant 0 : index
    %0 = memref.load %arg1[%c0] : memref<3xf32, #tpu.memory_space<smem>>
    %c1 = arith.constant 1 : index
    %1 = memref.load %arg1[%c1] : memref<3xf32, #tpu.memory_space<smem>>
    %c2 = arith.constant 2 : index
    %2 = memref.load %arg1[%c2] : memref<3xf32, #tpu.memory_space<smem>>
    %c0_0 = arith.constant 0 : index
    %c0_1 = arith.constant 0 : index
    %c0_2 = arith.constant 0 : index
    %3 = vector.load %arg2[%c0_0, %c0_1, %c0_2] : memref<1x4x422xf32, #tpu.memory_space<vmem>>, vector<1x4x422xf32>
    %4 = vector.shape_cast %3 : vector<1x4x422xf32> to vector<4x422xf32>
    %5 = vector.broadcast %0 : f32 to vector<4x422xf32>
    %6 = arith.mulf %4, %5 : vector<4x422xf32>
    %7 = vector.broadcast %1 : f32 to vector<4x422xf32>
    %8 = arith.addf %6, %7 : vector<4x422xf32>
    %9 = math.roundeven %8 : vector<4x422xf32>
    %cst = arith.constant 0.000000e+00 : f32
    %cst_3 = arith.constant 2.550000e+02 : f32
    %10 = vector.broadcast %cst : f32 to vector<4x422xf32>
    %11 = arith.maximumf %10, %9 : vector<4x422xf32>
    %12 = vector.broadcast %cst_3 : f32 to vector<4x422xf32>
    %13 = arith.minimumf %12, %11 : vector<4x422xf32>
    %14 = vector.broadcast %1 : f32 to vector<4x422xf32>
    %15 = arith.subf %13, %14 : vector<4x422xf32>
    %16 = vector.extract_strided_slice %15 {offsets = [0, 0], sizes = [4, 384], strides = [1, 1]} : vector<4x422xf32> to vector<4x384xf32>
    %c0_4 = arith.constant 0 : index
    %c0_5 = arith.constant 0 : index
    %17 = vector.load %arg6[%c0_4, %c0_5] : memref<36x384xf32, #tpu.memory_space<vmem>>, vector<4x384xf32>
    tpu.vector_store %arg6[%c0_4, %c0_5], %16 {strides = array<i32>} : memref<36x384xf32, #tpu.memory_space<vmem>>, vector<4x384xf32>,
    %18 = vector.extract_strided_slice %15 {offsets = [0, 1], sizes = [4, 384], strides = [1, 1]} : vector<4x422xf32> to vector<4x384xf32>
    %c4 = arith.constant 4 : index
    %c0_6 = arith.constant 0 : index
    %19 = vector.load %arg6[%c4, %c0_6] : memref<36x384xf32, #tpu.memory_space<vmem>>, vector<4x384xf32>
    tpu.vector_store %arg6[%c4, %c0_6], %18 {strides = array<i32>} : memref<36x384xf32, #tpu.memory_space<vmem>>, vector<4x384xf32>,
    %20 = vector.extract_strided_slice %15 {offsets = [0, 2], sizes = [4, 384], strides = [1, 1]} : vector<4x422xf32> to vector<4x384xf32>
    %c8 = arith.constant 8 : index
    %c0_7 = arith.constant 0 : index
    %21 = vector.load %arg6[%c8, %c0_7] : memref<36x384xf32, #tpu.memory_space<vmem>>, vector<4x384xf32>
    tpu.vector_store %arg6[%c8, %c0_7], %20 {strides = array<i32>} : memref<36x384xf32, #tpu.memory_space<vmem>>, vector<4x384xf32>,
    %22 = vector.extract_strided_slice %15 {offsets = [0, 18], sizes = [4, 384], strides = [1, 1]} : vector<4x422xf32> to vector<4x384xf32>
    %c12 = arith.constant 12 : index
    %c0_8 = arith.constant 0 : index
    %23 = vector.load %arg6[%c12, %c0_8] : memref<36x384xf32, #tpu.memory_space<vmem>>, vector<4x384xf32>
    tpu.vector_store %arg6[%c12, %c0_8], %22 {strides = array<i32>} : memref<36x384xf32, #tpu.memory_space<vmem>>, vector<4x384xf32>,
    %24 = vector.extract_strided_slice %15 {offsets = [0, 19], sizes = [4, 384], strides = [1, 1]} : vector<4x422xf32> to vector<4x384xf32>
    %c16 = arith.constant 16 : index
    %c0_9 = arith.constant 0 : index
    %25 = vector.load %arg6[%c16, %c0_9] : memref<36x384xf32, #tpu.memory_space<vmem>>, vector<4x384xf32>
    tpu.vector_store %arg6[%c16, %c0_9], %24 {strides = array<i32>} : memref<36x384xf32, #tpu.memory_space<vmem>>, vector<4x384xf32>,
    %26 = vector.extract_strided_slice %15 {offsets = [0, 20], sizes = [4, 384], strides = [1, 1]} : vector<4x422xf32> to vector<4x384xf32>
    %c20 = arith.constant 20 : index
    %c0_10 = arith.constant 0 : index
    %27 = vector.load %arg6[%c20, %c0_10] : memref<36x384xf32, #tpu.memory_space<vmem>>, vector<4x384xf32>
    tpu.vector_store %arg6[%c20, %c0_10], %26 {strides = array<i32>} : memref<36x384xf32, #tpu.memory_space<vmem>>, vector<4x384xf32>,
    %28 = vector.extract_strided_slice %15 {offsets = [0, 36], sizes = [4, 384], strides = [1, 1]} : vector<4x422xf32> to vector<4x384xf32>
    %c24 = arith.constant 24 : index
    %c0_11 = arith.constant 0 : index
    %29 = vector.load %arg6[%c24, %c0_11] : memref<36x384xf32, #tpu.memory_space<vmem>>, vector<4x384xf32>
    tpu.vector_store %arg6[%c24, %c0_11], %28 {strides = array<i32>} : memref<36x384xf32, #tpu.memory_space<vmem>>, vector<4x384xf32>,
    %30 = vector.extract_strided_slice %15 {offsets = [0, 37], sizes = [4, 384], strides = [1, 1]} : vector<4x422xf32> to vector<4x384xf32>
    %c28 = arith.constant 28 : index
    %c0_12 = arith.constant 0 : index
    %31 = vector.load %arg6[%c28, %c0_12] : memref<36x384xf32, #tpu.memory_space<vmem>>, vector<4x384xf32>
    tpu.vector_store %arg6[%c28, %c0_12], %30 {strides = array<i32>} : memref<36x384xf32, #tpu.memory_space<vmem>>, vector<4x384xf32>,
    %32 = vector.extract_strided_slice %15 {offsets = [0, 38], sizes = [4, 384], strides = [1, 1]} : vector<4x422xf32> to vector<4x384xf32>
    %c32 = arith.constant 32 : index
    %c0_13 = arith.constant 0 : index
    %33 = vector.load %arg6[%c32, %c0_13] : memref<36x384xf32, #tpu.memory_space<vmem>>, vector<4x384xf32>
    tpu.vector_store %arg6[%c32, %c0_13], %32 {strides = array<i32>} : memref<36x384xf32, #tpu.memory_space<vmem>>, vector<4x384xf32>,
    %c0_14 = arith.constant 0 : index
    %c0_15 = arith.constant 0 : index
    %34 = vector.load %arg6[%c0_14, %c0_15] : memref<36x384xf32, #tpu.memory_space<vmem>>, vector<36x384xf32>
    %35 = arith.truncf %34 : vector<36x384xf32> to vector<36x384xbf16>
    %c0_16 = arith.constant 0 : index
    %c0_17 = arith.constant 0 : index
    %36 = vector.load %arg3[%c0_16, %c0_17] : memref<8x36xbf16, #tpu.memory_space<vmem>>, vector<8x36xbf16>
    %cst_18 = arith.constant dense<0.000000e+00> : vector<8x384xf32>
    %37 = tpu.matmul %36, %35, %cst_18 {dimension_numbers = #tpu.dot_dimension_numbers<[1], [0], [0], [1], [0, 0, 1, 1], [], []>} : vector<8x36xbf16>, vector<36x384xbf16>, vector<8x384xf32> -> vector<8x384xf32>
    %38 = vector.broadcast %2 : f32 to vector<8x384xf32>
    %39 = arith.mulf %37, %38 : vector<8x384xf32>
    %c0_19 = arith.constant 0 : index
    %c0_20 = arith.constant 0 : index
    %40 = vector.load %arg4[%c0_19, %c0_20] : memref<8x1xf32, #tpu.memory_space<vmem>>, vector<8x1xf32>
    %41 = vector.broadcast %40 : vector<8x1xf32> to vector<8x384xf32>
    %42 = arith.addf %39, %41 : vector<8x384xf32>
    %c0_21 = arith.constant 0 : index
    %c0_22 = arith.constant 0 : index
    %c0_23 = arith.constant 0 : index
    %43 = vector.load %arg5[%c0_21, %c0_22, %c0_23] : memref<1x8x384xf32, #tpu.memory_space<vmem>>, vector<1x8x384xf32>
    %44 = vector.shape_cast %43 : vector<1x8x384xf32> to vector<8x384xf32>
    %45 = vector.shape_cast %42 : vector<8x384xf32> to vector<1x8x384xf32>
    tpu.vector_store %arg5[%c0_21, %c0_22, %c0_23], %45 {strides = array<i32>} : memref<1x8x384xf32, #tpu.memory_space<vmem>>, vector<1x8x384xf32>,
    return
  }
  func.func @transform_0(%arg0: i32) -> i32 {
    %c0_i32 = arith.constant 0 : i32
    %c0_i32_0 = arith.constant 0 : i32
    return %c0_i32 : i32
  }
  func.func @transform_1(%arg0: i32) -> (i32, i32, i32) {
    %c0_i32 = arith.constant 0 : i32
    %c0_i32_0 = arith.constant 0 : i32
    %c0_i32_1 = arith.constant 0 : i32
    return %arg0, %c0_i32, %c0_i32_0 : i32, i32, i32
  }
  func.func @transform_2(%arg0: i32) -> (i32, i32) {
    %c0_i32 = arith.constant 0 : i32
    %c0_i32_0 = arith.constant 0 : i32
    %c0_i32_1 = arith.constant 0 : i32
    return %c0_i32, %c0_i32_0 : i32, i32
  }
  func.func @transform_3(%arg0: i32) -> (i32, i32) {
    %c0_i32 = arith.constant 0 : i32
    %c0_i32_0 = arith.constant 0 : i32
    %c0_i32_1 = arith.constant 0 : i32
    return %c0_i32, %c0_i32_0 : i32, i32
  }
  func.func @transform_4(%arg0: i32) -> (i32, i32, i32) {
    %c0_i32 = arith.constant 0 : i32
    %c0_i32_0 = arith.constant 0 : i32
    %c0_i32_1 = arith.constant 0 : i32
    return %arg0, %c0_i32, %c0_i32_0 : i32, i32, i32
  }
}

</mosaic_0001>

<bundles_post_ra>
// kernel: tpu_custom_call.1
= control target key start
LH: loop header
LB: loop body
LE: loop exit
PB: predicated region body
PF: predicated region fallthrough
CT: control target
= control target key end

     0   :  { %9 = vsyncpa [#allocation6], 0  ;;  %s1127_s0 = inlined_call_operand.vmem [shape: f32[3], index: 0, kind: input, shape index: {}]   ;;  %s1128_s1 = inlined_call_operand.hbm [shape: f32[2,4,422], index: 1, kind: input, shape index: {}]   ;;  %s1129_s2 = inlined_call_operand.vmem [shape: bf16[8,36], index: 2, kind: input, shape index: {}]   ;;  %s1130_s3 = inlined_call_operand.vmem [shape: f32[8,1], index: 3, kind: input, shape index: {}]   ;;  %s1131_s4 = inlined_call_operand.hbm [shape: f32[2,8,384], index: 4, kind: output, shape index: {}]  }
   0x1   :  { %10 = vsyncpa [#allocation4], 0 }
   0x2   :  { %12 = vsyncpa [#allocation4 + $0x1], 0 }
   0x3   :  { %13 = vsyncpa [#allocation5], 0 }
   0x4   :  { %15 = vsyncpa [#allocation5 + $0x1], 0  ;;  %s907_s15 = smov 0   ;;  %s909_s16 = smov 0  }
   0x5   :  { %s911_s17 = smov 0   ;;  %s913_s18 = smov 0  }
   0x6 LB: > { %s928_s19 = sadd.s32 4294967295, %s866_s18   ;;  %s635_s20 = sadd.s32 4294967294, %s866_s18   ;;  %s866_s18 = sphi %s913_s18, %s1154_s18   ;;  %s862_s17 = sphi %s911_s17, %s1153_s17   ;;  %s858_s16 = sphi %s909_s16, %s1152_s16   ;;  %s854_s15 = sphi %s907_s15, %s1151_s15  }
   0x7   : > { %p62_p0 = scmp.ne.s32.totalorder %s858_s16, %s854_s15  ;;  %p1132_p1 = scmp.eq.s32.totalorder %s928_s19, 0 }
   0x8   : > { %p134_p3 = scmp.eq.s32.totalorder %s635_s20, 1  ;;  %p636_p5 = scmp.ge.s32.totalorder %s866_s18, 1 }
   0x9   : > { %p937_p4 = por %p1132_p1, %p62_p0  ;;  %p141_p7 = scmp.lt.s32.totalorder %s866_s18, 3 }
   0xa   : > { %p942_p6 = por %p134_p3, %p62_p0  ;;  %s154_s25 = sshll.u32 %s1127_s0, 4  ;;  %s155_s25 = int_to_ptr.vmem [resolvable:$true] %s154_s25 }
   0xb   : > { %s1136_s21 = scalar_select %p937_p4, 1, 0 }
   0xc   : > { %s1137_s22 = scalar_select %p942_p6, 1, 0 }
   0xd   : > { %p950_p8 = pnand %p636_p5, %p141_p7  ;;  %s958_s27 = sadd.s32 1, %s866_s18  }
   0xe   : > { %s46_s29 = ssub.s32 %s866_s18, %s958_s27  ;;  %s49_s5 = sadd.s32 1, %s862_s17 }
   0xf   : > { %s1138_s26 = scalar_select %p950_p8, 1, 0 }
  0x10   : > { %p694_p10 = pneg %p950_p8  ;;  %p968_p12 = scmp.eq.s32.totalorder %s46_s29, 0 }
  0x11   : > { %p56_p13 = scmp.ne.s32.totalorder %s862_s17, %s858_s16  ;;  %s755_s6 = scalar_lea.vmem %s155_s25, 16 }
  0x12   : > { %p962_p11 = pnand %p694_p10, %p1132_p1  ;;  %p756_p0 = scmp.ne.s32.totalorder %s155_s25, %s755_s6 }
  0x13   : > { %p763_p9 = scmp.lt.s32.totalorder %s155_s25, %s155_s25  ;;  %p764_p2 = scmp.lt.s32.totalorder %s755_s6, %s755_s6 }
  0x14   : > { %p757_p3 = pneg %p962_p11 }
  0x15   : > { %p765_p10 = por %p764_p2, %p763_p9 }
  0x16   : > { %p758_p5 = pnand %p757_p3, %p756_p0 }
  0x18   : > { %p759_p7 = pneg %p758_p5 }
  0x1a   : > { %p766_p1 = pnand %p765_p10, %p759_p7 }
  0x1c   : > { %769 = shalt.err (!%p766_p1)
}
  0x1d   : > { %s868_s7 = smov [#allocation3]   ;;  %p57_p2 = scmp.eq.s32.totalorder %s866_s18, 0 }
  0x1e   : > { %697 = dma.vmem_to_smem (!%p962_p11), %s155_s25, 16, %s868_s7, [#allocation6]  }
  0x1f   : > { %s982_s8 = scalar_select %p968_p12, %s862_s17, %s49_s5  }
  0x20   : > { %p1141_p1 = scmp.eq.s32.totalorder %s928_s19, 1  ;;  %p707_p0 = scmp.lt.s32.totalorder %s866_s18, 2 }
  0x21   : > { %s171_s10 = sand.u32 1, %s862_s17   ;;  %p58_p3 = por %p57_p2, %p56_p13 }
  0x22   : > { %p990_p9 = por %p1141_p1, %p56_p13  ;;  %s639_s11 = sshll.u32 %s171_s10, 4 }
  0x23   : > { %s653_s12 = sshll.u32 %s866_s18, 8  ;;  %s175_s23 = scalar_lea.vmem [#allocation7], %s639_s11 }
  0x24   : > { %s1142_s9 = scalar_select %p990_p9, 1, 0 }
  0x25   : > { %s1003_s20 = scalar_lea.hbm %s1128_s1, %s653_s12  ;;  %s183_s24 = sshll.u32 %s175_s23, 4  ;;  %s184_s24 = int_to_ptr.vmem [resolvable:$true] %s183_s24 }
  0x26   : > { %p1005_p11 = pnand %p707_p0, %p58_p3  ;;  %s172_s28 = scalar_lea.sflag [#allocation4], %s171_s10 }
  0x27   : > { %s770_s29 = scalar_lea.hbm %s1003_s20, 256  ;;  %s775_s6 = scalar_lea.hbm %s1128_s1, 512 }
  0x28   : > { %p771_p12 = scmp.ne.s32.totalorder %s1003_s20, %s770_s29  ;;  %p772_p13 = pneg %p1005_p11 }
  0x29   : > { %p776_p10 = scmp.lt.s32.totalorder %s1003_s20, %s1128_s1  ;;  %p777_p2 = scmp.lt.s32.totalorder %s775_s6, %s770_s29 }
  0x2a   : > { %p773_p5 = pnand %p772_p13, %p771_p12 }
  0x2b   : > { %p778_p1 = por %p777_p2, %p776_p10 }
  0x2c   : > { %p774_p7 = pneg %p773_p5 }
  0x2e   : > { %p779_p0 = pnand %p778_p1, %p774_p7 }
  0x30   : > { %782 = shalt.err (!%p779_p0)
}
  0x31   : > { %s783_s12 = scalar_lea.vmem %s184_s24, 256  ;;  %s869_s10 = smov [#allocation7]  }
  0x32   : > { %p784_p3 = scmp.ne.s32.totalorder %s184_s24, %s783_s12  ;;  %s788_s13 = sshll.u32 %s869_s10, 4  ;;  %s789_s13 = int_to_ptr.vmem [resolvable:$false] %s788_s13 }
  0x33   : > { %s790_s14 = scalar_lea.vmem %s789_s13, 512  ;;  %p791_p12 = scmp.lt.s32.totalorder %s184_s24, %s789_s13 }
  0x34   : > { %p786_p6 = pnand %p784_p3, %p772_p13  ;;  %p792_p5 = scmp.lt.s32.totalorder %s790_s14, %s783_s12 }
  0x36   : > { %p787_p9 = pneg %p786_p6  ;;  %p793_p4 = por %p792_p5, %p791_p12 }
  0x38   : > { %p794_p8 = pnand %p793_p4, %p787_p9 }
  0x3a   : > { %797 = shalt.err (!%p794_p8)
}
  0x3b   : > { %701 = dma.hbm_to_vmem [thread:$0]  (!%p1005_p11), %s1003_s20, 256, %s184_s24, %s172_s28  }
  0x3c   : > { %p1144_p7 = scmp.ne.s32.totalorder %s1138_s26, 0 }
  0x3d   : > { %p1145_p10 = scmp.eq.s32.totalorder (!%p1144_p7), %s928_s19, 0 }
  0x3e   : > { %192 = sbr.rel (%p1144_p7) target bundleno = 500 (0x1f4), region = 36 }
  0x43   : > { %841 = dma.done.wait (%p1145_p10), [#allocation6], 16   ;;  %p1146_p6 = pmov %p1145_p10 }
  0x44   : > { %s1030_s23 = sand.u32 1, %s858_s16   ;;  %p1147_p4 = scmp.ne.s32.totalorder %s1136_s21, 0 }
  0x45   : > { %843 = vsyncadd (%p1146_p6), [#allocation6], 4294967280  ;;  %s644_s29 = sshll.u32 %s1030_s23, 4  ;;  %s199_s30 = scalar_lea.sflag [#allocation4], %s1030_s23 }
  0x46   : > { %s202_s25 = scalar_lea.vmem [#allocation7], %s644_s29 }
  0x47   : > { %845 = dma.done.wait (%p1147_p4), %s199_s30, 256  }
  0x48   : > { %847 = vsyncadd (%p1147_p4), %s199_s30, 4294967040 }
  0x49   : > { %207 = sfence }
  0x4a   : > { %s229_s26 = sld [smem:[#allocation3]]  ;;  %v232_v0 = vld [vmem:[%s202_s25] sm:$0xff]  ;;  %v233_v1 = vld [vmem:[%s202_s25 + $0x8] sm:$0xff]  ;;  %s870_s21 = smov 90   ;;  %v875_v30 = vmov 0.0   ;;  %v879_v33 = vmov 0  }
  0x4b   : > { %s645_s20 = sld [smem:[#allocation3 + $0x1]]  ;;  %s871_s24 = smov 109   ;;  %658 = vmatprep.subr.bf16.mxu1 %v875_v30  ;;  %473 = vmatprep.mubr.bf16.mxu0 %v879_v33  ;;  %vm880_vm2 = vmmov 0   ;;  %v526_v34 = vld [vmem:[%s1130_s3] sm:$0xff]  ;;  %vm392_vm3 = vcmask 736256   ;;  %vm338_vm4 = vcmask 883712  }
  0x4c   : > { %s872_s28 = smov 108   ;;  %s873_s5 = smov 92   ;;  %754 = vset.pattern.permute.xlu0 %v879_v33  ;;  %664 = vmatprep.mubr.msk.bf16.mxu1 %vm880_vm2, %v875_v30  ;;  %vm374_vm5 = vcmask 744448   ;;  %vm431_vm6 = vcmask 1041408   ;;  %vm320_vm7 = vcmask 891904   ;;  %vm356_vm8 = vcmask 752640  }
  0x4d   : > { %s874_s6 = smov 91   ;;  %s876_s7 = smov 127   ;;  %vm265_vm9 = vcmask 1039360   ;;  %vm284_vm10 = vcmask 1031168   ;;  %vm302_vm11 = vcmask 900096   ;;  %vm427_vm12 = vcmask 293888  }
  0x4e   : > { %s877_s11 = smov 126   ;;  %s878_s12 = smov 110  }
  0x4f   : > { %s646_s30 = sld [smem:[#allocation3 + $0x2]]  ;;  %s668_s25 = smul.u32 24, %s1030_s23 }
  0x50   : > { %v234_v2 = vstv %s229_s26  ;;  %s685_s26 = smul.u32 384, %s928_s19  ;;  %s539_s19 = scalar_lea.sflag [#allocation5], %s1030_s23 }
  0x51   : > { %v236_v3 = vmul.f32 %v234_v2, %v233_v1  ;;  %v237_v4 = vstv %s645_s20  ;;  %v235_v5 = vmul.f32 %v234_v2, %v232_v0  ;;  %s227_s20 = scalar_lea.vmem [#allocation8], %s668_s25  ;;  %p1148_p9 = scmp.ne.s32.totalorder %s1142_s9, 0 }
  0x53   : > { %v239_v6 = vadd.f32 %v237_v4, %v236_v3  ;;  %v238_v7 = vadd.f32 %v237_v4, %v235_v5 }
  0x55   : > { %v679_v8 = vcvt.f32.s32 %v239_v6  ;;  %v677_v9 = vand.u32 2147483647, %v239_v6  ;;  %v671_v10 = vcvt.f32.s32 %v238_v7  ;;  %v682_v12 = vand.u32 2147483648, %v239_v6 }
  0x56   : > { %v669_v13 = vand.u32 2147483647, %v238_v7  ;;  %v674_v15 = vand.u32 2147483648, %v238_v7 }
  0x57   : > { %v680_v11 = vcvt.s32.f32 %v679_v8  ;;  %v672_v14 = vcvt.s32.f32 %v671_v10  ;;  %vm678_vm0 = vcmp.lt.f32.partialorder %v677_v9, 8388608.0 }
  0x58   : > { %vm670_vm1 = vcmp.lt.f32.partialorder %v669_v13, 8388608.0 }
  0x59   : > { %v681_v16 = vand.u32 2147483647, %v680_v11  ;;  %v673_v17 = vand.u32 2147483647, %v672_v14 }
  0x5b   : > { %v683_v18 = vor.u32 %v682_v12, %v681_v16  ;;  %v675_v19 = vor.u32 %v674_v15, %v673_v17 }
  0x5d   : > { %v684_v20 = vsel %vm678_vm0, %v683_v18, %v239_v6  ;;  %v676_v22 = vsel %vm670_vm1, %v675_v19, %v238_v7 }
  0x5e   : > { %v243_v21 = vmax.f32 %v684_v20, 0.0  ;;  %v242_v23 = vmax.f32 %v676_v22, 0.0 }
  0x60   : > { %v245_v24 = vmin.f32 %v243_v21, 255.0  ;;  %v244_v25 = vmin.f32 %v242_v23, 255.0 }
  0x62   : > { %v247_v26 = vsub.f32 %v245_v24, %v237_v4  ;;  %v246_v27 = vsub.f32 %v244_v25, %v237_v4 }
  0x64   : > { %388 = vrot.lane.b32.xlu1 %v247_v26, %s870_s21  ;;  %254 = vst [vmem:[#allocation2 + $0x58] sm:$0xf] %v247_v26  ;;  %384 = vrot.lane.b32.xlu0 %v246_v27, %s870_s21  ;;  %252 = vst [vmem:[#allocation2 + $0x30] sm:$0xf] %v246_v27  ;;  %v250_v28 = vcombine.high %v246_v27, %v246_v27  ;;  %v275_v29 = vcombine.high %v247_v26, %v247_v26 }
  0x65   : > { %v256_v31 = vcombine.low %v247_v26, %v247_v26  ;;  %v255_v32 = vcombine.low %v246_v27, %v246_v27 }
  0x66   : > { %253 = vst [vmem:[#allocation2] sm:$0xf] %v250_v28 }
  0x68   : > { %316 = vrot.lane.b32.xlu1 %v247_v26, %s871_s24  ;;  %332 = vrot.lane.b32.xlu0 %v246_v27, %s872_s28 }
  0x6c   : > { %352 = vrot.lane.b32.xlu1 %v247_v26, %s873_s5  ;;  %368 = vrot.lane.b32.xlu0 %v246_v27, %s874_s6 }
  0x70   : > { %390 = vrot.lane.b32.xlu1 %v275_v29, %s870_s21  ;;  %312 = vrot.lane.b32.xlu0 %v246_v27, %s871_s24 }
  0x74   : > { %334 = vrot.lane.b32.xlu1 %v256_v31, %s872_s28  ;;  %348 = vrot.lane.b32.xlu0 %v246_v27, %s873_s5 }
  0x78   : > { %370 = vrot.lane.b32.xlu1 %v256_v31, %s874_s6  ;;  %386 = vrot.lane.b32.xlu0 %v250_v28, %s870_s21  ;;  %s553_s21 = sshll.u32 %s227_s20, 4  ;;  %s1086_s21 = int_to_ptr.vmem [resolvable:$true] %s553_s21 }
  0x7c   : > { %330 = vrot.lane.b32.xlu1 %v255_v32, %s872_s28  ;;  %314 = vrot.lane.b32.xlu0 %v250_v28, %s871_s24 }
  0x80   : > { %366 = vrot.lane.b32.xlu1 %v255_v32, %s874_s6  ;;  %350 = vrot.lane.b32.xlu0 %v250_v28, %s873_s5 }
  0x84   : > { %336 = vrot.lane.b32.xlu1 %v247_v26, %s872_s28  ;;  %318 = vrot.lane.b32.xlu0 %v275_v29, %s871_s24 }
  0x88   : > { %372 = vrot.lane.b32.xlu1 %v247_v26, %s874_s6  ;;  %354 = vrot.lane.b32.xlu0 %v275_v29, %s873_s5  ;;  %s1084_s5 = scalar_lea.hbm %s1131_s4, %s685_s26  ;;  %s798_s6 = scalar_lea.vmem %s1086_s21, 384 }
  0x89   : > { %p799_p8 = scmp.ne.s32.totalorder %s1086_s21, %s798_s6 }
  0x8b   : > { %p800_p11 = pnand %p799_p8, %p1148_p9 }
  0x8c   : > { %261 = vrot.lane.b32.xlu1 %v256_v31, %s876_s7  ;;  %259 = vrot.lane.b32.xlu0 %v246_v27, %s876_s7 }
  0x8d   : > { %p801_p13 = pneg %p800_p11 }
  0x90   : > { %280 = vrot.lane.b32.xlu1 %v247_v26, %s877_s11  ;;  %278 = vrot.lane.b32.xlu0 %v250_v28, %s877_s11 }
  0x94   : > { %298 = vrot.lane.b32.xlu1 %v256_v31, %s878_s12  ;;  %296 = vrot.lane.b32.xlu0 %v246_v27, %s878_s12 }
  0x98   : > { %276 = vrot.lane.b32.xlu1 %v246_v27, %s877_s11  ;;  %257 = vrot.lane.b32.xlu0 %v255_v32, %s876_s7 }
  0x9c   : > { %263 = vrot.lane.b32.xlu1 %v247_v26, %s876_s7  ;;  %294 = vrot.lane.b32.xlu0 %v255_v32, %s878_s12  ;;  %s881_s7 = smov [#allocation8]  }
  0xa0   : > { %300 = vrot.lane.b32.xlu1 %v247_v26, %s878_s12  ;;  %282 = vrot.lane.b32.xlu0 %v275_v29, %s877_s11  ;;  %s802_s11 = sshll.u32 %s881_s7, 4  ;;  %s803_s11 = int_to_ptr.vmem [resolvable:$false] %s802_s11 }
  0xa1   : > { %s804_s12 = scalar_lea.vmem %s803_s11, 768  ;;  %p805_p2 = scmp.lt.s32.totalorder %s1086_s21, %s803_s11 }
  0xa2   : > { %p806_p1 = scmp.lt.s32.totalorder %s804_s12, %s798_s6 }
  0xa4   : > { %529 = vperm.xlu0 %754, %v526_v34   ;;  %p807_p0 = por %p806_p1, %p805_p2 }
  0xa6   : > { %p808_p3 = pnand %p807_p0, %p801_p13 }
  0xd6   : > { %v389_v35 = vpop.permute.xlu1 %388  ;;  %v385_v36 = vpop.permute.xlu0 %384 }
  0xda   : > { %v317_v37 = vpop.permute.xlu1 %316  ;;  %v333_v38 = vpop.permute.xlu0 %332 }
  0xde   : > { %v1043_v39 = vpop.permute.xlu1 %352  ;;  %v369_v40 = vpop.permute.xlu0 %368 }
  0xe2   : > { %v391_v41 = vpop.permute.xlu1 %390  ;;  %v313_v43 = vpop.permute.xlu0 %312 }
  0xe3   : > { %v395_v42 = vsel %vm392_vm3, %v389_v35, %v391_v41 }
  0xe4   : > { %401 = vst [vmem:[#allocation2 + $0x28] sm:$0xf] %v395_v42 }
  0xe6   : > { %v335_v44 = vpop.permute.xlu1 %334  ;;  %v349_v46 = vpop.permute.xlu0 %348 }
  0xe7   : > { %v340_v45 = vsel %vm338_vm4, %v333_v38, %v335_v44 }
  0xe8   : > { %346 = vst [vmem:[#allocation2 + $0x48] sm:$0xf0] %v340_v45 }
  0xea   : > { %v371_v47 = vpop.permute.xlu1 %370  ;;  %v387_v49 = vpop.permute.xlu0 %386 }
  0xeb   : > { %v376_v48 = vsel %vm374_vm5, %v369_v40, %v371_v47  ;;  %v416_v50 = vld [vmem:[#allocation2 + $0x28] sm:$0xf]  ;;  %v393_v51 = vsel %vm392_vm3, %v385_v36, %v387_v49  ;;  %v394_v52 = vsel %vm392_vm3, %v387_v49, %v389_v35 }
  0xec   : > { %382 = vst [vmem:[#allocation2 + $0x10] sm:$0xf0] %v376_v48  ;;  %v425_v53 = vpack.c.bf16 %v416_v50, %v416_v50  ;;  %399 = vst [vmem:[#allocation2 + $0x60] sm:$0xf] %v393_v51  ;;  %v426_v50 = vld [vmem:[%s1129_s2] sm:$0xf] }
  0xed   : > { %400 = vst [vmem:[#allocation2 + $0x70] sm:$0xf] %v394_v52 }
  0xee   : > { %v331_v54 = vpop.permute.xlu1 %330  ;;  %v439_v55 = vsel %vm431_vm6, %v425_v53, 0  ;;  %v315_v57 = vpop.permute.xlu0 %314 }
  0xef   : > { %v339_v56 = vsel %vm338_vm4, %v331_v54, %v333_v38  ;;  %659 = vmatpush3.bf16.msra.mxu1 %v439_v55  ;;  %v321_v58 = vsel %vm320_vm7, %v313_v43, %v315_v57  ;;  %v322_v59 = vsel %vm320_vm7, %v315_v57, %v317_v37  ;;  %v522_v54 = vstv %s646_s30 }
  0xf0   : > { %345 = vst [vmem:[#allocation2 + $0x8] sm:$0xf0] %v339_v56  ;;  %660 = vmatprep.subr.bf16.mxu1 %v875_v30  ;;  %327 = vst [vmem:[#allocation2 + $0x8] sm:$0xf] %v321_v58 }
  0xf1   : > { %328 = vst [vmem:[#allocation2 + $0x48] sm:$0xf] %v322_v59 }
  0xf2   : > { %v367_v60 = vpop.permute.xlu1 %366  ;;  %v351_v62 = vpop.permute.xlu0 %350 }
  0xf3   : > { %v375_v61 = vsel %vm374_vm5, %v367_v60, %v369_v40  ;;  %v357_v63 = vsel %vm356_vm8, %v349_v46, %v351_v62  ;;  %v358_v0 = vsel %vm356_vm8, %v351_v62, %v1043_v39  ;;  %v414_v2 = vld [vmem:[#allocation2 + $0x60] sm:$0xf] }
  0xf4   : > { %381 = vst [vmem:[#allocation2 + $0x20] sm:$0xf0] %v375_v61  ;;  %v415_v1 = vld [vmem:[#allocation2 + $0x70] sm:$0xf]  ;;  %363 = vst [vmem:[#allocation2 + $0x20] sm:$0xf] %v357_v63  ;;  %v423_v4 = vpack.c.bf16 %v414_v2, %v414_v2 }
  0xf5   : > { %364 = vst [vmem:[#allocation2 + $0x10] sm:$0xf] %v358_v0  ;;  %v424_v3 = vpack.c.bf16 %v415_v1, %v415_v1 }
  0xf6   : > { %v337_v5 = vpop.permute.xlu1 %336  ;;  %v319_v7 = vpop.permute.xlu0 %318  ;;  %v433_v8 = vsel %vm431_vm6, %v423_v4, 0 }
  0xf7   : > { %v341_v6 = vsel %vm338_vm4, %v335_v44, %v337_v5  ;;  %647 = vmatprep.subr.msk.bf16.mxu0 %vm431_vm6, %v424_v3  ;;  %v323_v9 = vsel %vm320_vm7, %v317_v37, %v319_v7  ;;  %v408_v16 = vld [vmem:[#allocation2 + $0x8] sm:$0xff] }
  0xf8   : > { %347 = vst [vmem:[#allocation2 + $0x40] sm:$0xf0] %v341_v6  ;;  %452 = vmatpush1.bf16.msra.mxu0 %v433_v8  ;;  %329 = vst [vmem:[#allocation2 + $0x40] sm:$0xf] %v323_v9  ;;  %v409_v13 = vld [vmem:[#allocation2 + $0x48] sm:$0xff] }
  0xfa   : > { %v373_v10 = vpop.permute.xlu1 %372  ;;  %v355_v12 = vpop.permute.xlu0 %354 }
  0xfb   : > { %v377_v11 = vsel %vm374_vm5, %v371_v47, %v373_v10  ;;  %v359_v14 = vsel %vm356_vm8, %v1043_v39, %v355_v12  ;;  %v411_v17 = vld [vmem:[#allocation2 + $0x20] sm:$0xff] }
  0xfc   : > { %383 = vst [vmem:[#allocation2 + $0x38] sm:$0xf0] %v377_v11  ;;  %v412_v15 = vld [vmem:[#allocation2 + $0x10] sm:$0xff]  ;;  %365 = vst [vmem:[#allocation2 + $0x38] sm:$0xf] %v359_v14  ;;  %v420_v19 = vpack.c.bf16 %v411_v17, %v408_v16 }
  0xfd   : > { %v421_v18 = vpack.c.bf16 %v412_v15, %v409_v13 }
  0xfe   : > { %v262_v20 = vpop.permute.xlu1 %261  ;;  %v260_v21 = vpop.permute.xlu0 %259 }
  0xff   : > { %453 = vmatprep.subr.bf16.mxu0 %v421_v18  ;;  %v267_v22 = vsel %vm265_vm9, %v260_v21, %v262_v20  ;;  %v410_v26 = vld [vmem:[#allocation2 + $0x40] sm:$0xff] }
 0x100   : > { %454 = vmatpush1.bf16.msra.mxu0 %v420_v19  ;;  %273 = vst [vmem:[#allocation2] sm:$0xf0] %v267_v22 }
 0x102   : > { %v281_v23 = vpop.permute.xlu1 %280  ;;  %v279_v24 = vpop.permute.xlu0 %278 }
 0x103   : > { %v286_v25 = vsel %vm284_vm10, %v279_v24, %v281_v23  ;;  %v413_v27 = vld [vmem:[#allocation2 + $0x38] sm:$0xff] }
 0x104   : > { %292 = vst [vmem:[#allocation2 + $0x50] sm:$0xf] %v286_v25  ;;  %v422_v28 = vpack.c.bf16 %v413_v27, %v410_v26 }
 0x106   : > { %v299_v29 = vpop.permute.xlu1 %298  ;;  %661 = vmatpush3.bf16.msra.mxu1 %v422_v28  ;;  %v297_v31 = vpop.permute.xlu0 %296 }
 0x107   : > { %v304_v32 = vsel %vm302_vm11, %v297_v31, %v299_v29  ;;  %662 = vmatprep.subr.bf16.mxu1 %v875_v30  ;;  %v403_v41 = vld [vmem:[#allocation2] sm:$0xff] }
 0x108   : > { %310 = vst [vmem:[#allocation2 + $0x50] sm:$0xf0] %v304_v32 }
 0x10a   : > { %v277_v33 = vpop.permute.xlu1 %276  ;;  %v258_v35 = vpop.permute.xlu0 %257 }
 0x10b   : > { %v285_v34 = vsel %vm284_vm10, %v277_v33, %v279_v24  ;;  %v266_v36 = vsel %vm265_vm9, %v258_v35, %v260_v21 }
 0x10c   : > { %291 = vst [vmem:[#allocation2 + $0x18] sm:$0xf] %v285_v34  ;;  %272 = vst [vmem:[#allocation2 + $0x30] sm:$0xf0] %v266_v36 }
 0x10e   : > { %v264_v37 = vpop.permute.xlu1 %263  ;;  %v295_v39 = vpop.permute.xlu0 %294 }
 0x10f   : > { %v268_v38 = vsel %vm265_vm9, %v262_v20, %v264_v37  ;;  %v303_v40 = vsel %vm302_vm11, %v295_v39, %v297_v31  ;;  %v406_v42 = vld [vmem:[#allocation2 + $0x50] sm:$0xff] }
 0x110   : > { %274 = vst [vmem:[#allocation2 + $0x58] sm:$0xf0] %v268_v38  ;;  %309 = vst [vmem:[#allocation2 + $0x18] sm:$0xf0] %v303_v40  ;;  %v418_v30 = vpack.c.bf16 %v406_v42, %v403_v41 }
 0x112   : > { %v301_v43 = vpop.permute.xlu1 %300  ;;  %v283_v45 = vpop.permute.xlu0 %282  ;;  %455 = vmatprep.subr.bf16.mxu0 %v418_v30 }
 0x113   : > { %v305_v44 = vsel %vm302_vm11, %v299_v29, %v301_v43  ;;  %v287_v46 = vsel %vm284_vm10, %v281_v23, %v283_v45  ;;  %v402_v47 = vld [vmem:[#allocation2 + $0x30] sm:$0xff] }
 0x114   : > { %311 = vst [vmem:[#allocation2 + $0x68] sm:$0xf0] %v305_v44  ;;  %293 = vst [vmem:[#allocation2 + $0x68] sm:$0xf] %v287_v46 }
 0x117   : > { %v405_v48 = vld [vmem:[#allocation2 + $0x18] sm:$0xff] }
 0x118   : > { %v417_v49 = vpack.c.bf16 %v405_v48, %v402_v47  ;;  %v404_v51 = vld [vmem:[#allocation2 + $0x58] sm:$0xff] }
 0x11a   : > { %456 = vmatpush1.bf16.msra.mxu0 %v417_v49 }
 0x11b   : > { %v407_v52 = vld [vmem:[#allocation2 + $0x68] sm:$0xff] }
 0x11c   : > { %v419_v53 = vpack.c.bf16 %v407_v52, %v404_v51 }
 0x11d   : > { %648 = vmatmul.mubr.msk.bf16.vlgmr.msra.gmra.mxu0 %vm427_vm12, %v426_v50 }
 0x11e   : > { %663 = vmatpush3.bf16.msra.mxu1 %v419_v53 }
 0x11f   : > { %v530_v56 = vpop.permute.xlu0 %529 }
 0x121   : > { %665 = vmatmul.mubr.msk.bf16.vlgmr.msra.gmra.mxu1 %vm427_vm12, %v426_v50 }
 0x1dd   : > { %v475_v55 = vpop.f32.mrf.mxu0 }
 0x1de   : > { %v523_v57 = vmul.f32 %v522_v54, %v475_v55 }
 0x1df   : > { %v477_v58 = vpop.f32.mrf.mxu0 }
 0x1e0   : > { %v524_v59 = vmul.f32 %v522_v54, %v477_v58  ;;  %v532_v60 = vadd.f32 %v530_v56, %v523_v57 }
 0x1e1   : > { %v516_v61 = vpop.f32.mrf.mxu1  ;;  %v479_v62 = vpop.f32.mrf.mxu0 }
 0x1e2   : > { %v525_v63 = vmul.f32 %v522_v54, %v516_v61  ;;  %v533_v0 = vadd.f32 %v530_v56, %v524_v59  ;;  %535 = vst [vmem:[%s227_s20] sm:$0xff] %v532_v60 }
 0x1e3   : > { %v480_v1 = vpop.f32.mrf.mxu0  ;;  %v666_v2 = vpop.f32.mrf.mxu1 }
 0x1e4   : > { %v534_v3 = vadd.f32 %v530_v56, %v525_v63  ;;  %536 = vst [vmem:[%s227_s20 + $0x8] sm:$0xff] %v533_v0 }
 0x1e5   : > { %v519_v4 = vpop.f32.mrf.mxu1 }
 0x1e6   : > { %537 = vst [vmem:[%s227_s20 + $0x10] sm:$0xff] %v534_v3 }
 0x1e7   : > { %v667_v5 = vpop.f32.mrf.mxu1 }
 0x1e8   : > { %811 = shalt.err (!%p808_p3)
}
 0x1e9   : > { %s812_s10 = scalar_lea.hbm %s1084_s5, 384  ;;  %s816_s14 = scalar_lea.hbm %s1131_s4, 768 }
 0x1ea   : > { %p813_p12 = scmp.ne.s32.totalorder %s1084_s5, %s812_s10  ;;  %p817_p10 = scmp.lt.s32.totalorder %s1084_s5, %s1131_s4 }
 0x1eb   : > { %p818_p6 = scmp.lt.s32.totalorder %s816_s14, %s812_s10 }
 0x1ec   : > { %p814_p5 = pnand %p813_p12, %p1148_p9 }
 0x1ed   : > { %p819_p4 = por %p818_p6, %p817_p10 }
 0x1ee   : > { %p815_p7 = pneg %p814_p5 }
 0x1f0   : > { %p820_p8 = pnand %p819_p4, %p815_p7 }
 0x1f2   : > { %823 = shalt.err (!%p820_p8)
}
 0x1f3   : > { %692 = dma.vmem_to_hbm [thread:$0]  (%p1148_p9), %s1086_s21, 384, %s1084_s5, %s539_s19  }
 0x1f4 PF: > { %s565_s25 = sand.u32 1, %s854_s15   ;;  %p1149_p11 = scmp.ne.s32.totalorder %s1137_s22, 0 }
 0x1f5   : > { %p1150_p13 = scmp.ge.s32.totalorder %s866_s18, 2  ;;  %s566_s26 = scalar_lea.sflag [#allocation5], %s565_s25 }
 0x1f7   : > { %p703_p2 = pnand %p1150_p13, %p1149_p11 }
 0x1f9   : > { %p704_p1 = pneg %p703_p2 }
 0x1fb   : > { %849 = dma.done.wait (%p704_p1), %s566_s26, 384  }
 0x1fc   : > { %851 = vsyncadd (%p704_p1), %s566_s26, 4294966912  ;;  %p18_p0 = scmp.ge.s32.totalorder %s958_s27, 4   ;;  %s1151_s15 = smov %s858_s16 }
 0x1fd   : > { %s1152_s16 = smov %s862_s17  ;;  %s1153_s17 = smov %s982_s8 }
 0x1fe   : > { %s1154_s18 = smov %s958_s27  ;;  %20 = sbr.rel (!%p18_p0) target bundleno = 6 (0x6), region = 86 }
 0x203   :  { %571 = vsyncpa [#allocation4], 1 }
 0x204   :  { %573 = vsyncpa [#allocation4 + $0x1], 1 }
 0x205   :  { %574 = vsyncpa [#allocation5], 1 }
 0x206   :  { %576 = vsyncpa [#allocation5 + $0x1], 1 }
 0x207   :  { %577 = vsyncpa [#allocation6], 1 }
 0x208   :  { %579 = vsyncpa [#allocation6 + $0x1], 1 }

</bundles_post_ra>
